<compile_context>
chip_gen: v7x
topology: tpu7x:2x2x1
jax: 0.10.0
libtpu: 0.0.40
codegen_flags: <defaults>
</compile_context>

<pallas_src>
import functools
from dataclasses import dataclass

import jax
import jax.numpy as jnp
from jax.experimental import pallas as pl
from jax.experimental.pallas import tpu as pltpu


@dataclass
class Config:
    debug: bool = False
    d_embd: int = 768
    layer_norm_epsilon: float = 1e-05
    vocab_size: int = 50257
    initializer_range: float = 0.02
    n_ctx: int = 1024
    d_head: int = 64
    d_inner: int = 3072
    n_heads: int = 12
    n_layer: int = 12


def layernorm_kernel(x_ref, w_ref, b_ref, o_ref, *, eps):
    # x_ref: (block_rows, D); w_ref/b_ref: (1, D)
    x = x_ref[...].astype(jnp.float32)
    d_inv = 1.0 / x.shape[-1]
    # Single sweep: sum and sum-of-squares, then biased variance (F.layer_norm).
    row_sum = jnp.sum(x, axis=-1, keepdims=True)
    row_sqsum = jnp.sum(x * x, axis=-1, keepdims=True)
    mean = row_sum * d_inv
    var = jnp.maximum(row_sqsum * d_inv - mean * mean, 0.0)
    inv = jax.lax.rsqrt(var + eps)
    w = w_ref[...].astype(jnp.float32)
    b = b_ref[...].astype(jnp.float32)
    o_ref[...] = ((x - mean) * inv * w + b).astype(o_ref.dtype)


def layer_norm_pallas(x, weight, bias, eps=1e-5, block_rows=1024):
    orig_shape = x.shape
    d = orig_shape[-1]
    x2 = x.reshape(-1, d)
    rows = x2.shape[0]

    itemsize = jnp.dtype(x.dtype).itemsize
    # Sublane-packing minimum rows per dtype width (f32: 8, bf16: 16, int8/fp8: 32).
    min_rows = {4: 8, 2: 16, 1: 32}.get(itemsize, 8)

    # Clamp block_rows: no larger than rows rounded up to the packing minimum.
    br = min(block_rows, pl.cdiv(rows, min_rows) * min_rows)
    br = max(br, min_rows)

    grid_rows = pl.cdiv(rows, br)
    padded_rows = grid_rows * br
    if padded_rows != rows:
        x2 = jnp.pad(x2, ((0, padded_rows - rows), (0, 0)))

    w2 = weight.reshape(1, d)
    b2 = bias.reshape(1, d)
    param_itemsize = jnp.dtype(weight.dtype).itemsize

    # input + output tiles, each double-buffered, plus params and headroom.
    vmem_needed = 2 * 2 * br * d * itemsize + 4 * d * param_itemsize + (1 << 20)
    vmem_limit = int(max(vmem_needed, 16 * 1024 * 1024))

    cost = pl.CostEstimate(
        flops=10 * padded_rows * d,
        transcendentals=padded_rows,
        bytes_accessed=2 * padded_rows * d * itemsize + 2 * d * param_itemsize,
    )

    out = pl.pallas_call(
        functools.partial(layernorm_kernel, eps=eps),
        out_shape=jax.ShapeDtypeStruct((padded_rows, d), x.dtype),
        grid_spec=pltpu.PrefetchScalarGridSpec(
            num_scalar_prefetch=0,
            grid=(grid_rows,),
            in_specs=[
                pl.BlockSpec((br, d), lambda i: (i, 0)),
                pl.BlockSpec((1, d), lambda i: (0, 0)),
                pl.BlockSpec((1, d), lambda i: (0, 0)),
            ],
            out_specs=pl.BlockSpec((br, d), lambda i: (i, 0)),
        ),
        compiler_params=pltpu.CompilerParams(
            dimension_semantics=("parallel",),
            vmem_limit_bytes=vmem_limit,
        ),
        cost_estimate=cost,
    )(x2, w2, b2)

    if padded_rows != rows:
        out = out[:rows]
    return out.reshape(orig_shape)


if __name__ == "__main__":
    cfg = Config()
    key = jax.random.PRNGKey(0)

    batch, seq = 2, 8
    x = jax.random.normal(key, (batch, seq, cfg.d_embd), dtype=jnp.float32)

    # Deterministic parameter init matching nn.Parameter(torch.ones/zeros(d_embd))
    weight = jnp.ones((cfg.d_embd,), dtype=jnp.float32)
    bias = jnp.zeros((cfg.d_embd,), dtype=jnp.float32)

    y = layer_norm_pallas(x, weight, bias, eps=cfg.layer_norm_epsilon)
    y = jax.block_until_ready(y)

    # Reference check in plain JAX (F.layer_norm semantics: biased variance)
    mean = jnp.mean(x, axis=-1, keepdims=True)
    var = jnp.mean((x - mean) ** 2, axis=-1, keepdims=True)
    y_ref = (x - mean) / jnp.sqrt(var + cfg.layer_norm_epsilon) * weight + bias
    assert jnp.allclose(y, y_ref, atol=1e-4, rtol=1e-5), (
        float(jnp.max(jnp.abs(y - y_ref)))
    )

    print("KERNEL_OK")
</pallas_src>

<mosaic_0001>
module attributes {stable_mosaic.version = 11 : i64} {
  func.func @layernorm_kernel(%arg0: i32, %arg1: memref<16x768xf32, #tpu.memory_space<vmem>>, %arg2: memref<1x768xf32, #tpu.memory_space<vmem>>, %arg3: memref<1x768xf32, #tpu.memory_space<vmem>>, %arg4: memref<16x768xf32, #tpu.memory_space<vmem>>) attributes {dimension_semantics = [#tpu.dimension_semantics<parallel>], iteration_bounds = array<i64: 1>, scalar_prefetch = 0 : i64, scratch_operands = 0 : i64, tpu.core_type = #tpu.core_type<tc>, window_params = [{transform_indices = @transform_0, window_bounds = array<i64: 16, 768>}, {pipeline_mode = #tpu.pipeline_mode<synchronous>, transform_indices = @transform_1, window_bounds = array<i64: 1, 768>}, {pipeline_mode = #tpu.pipeline_mode<synchronous>, transform_indices = @transform_2, window_bounds = array<i64: 1, 768>}, {transform_indices = @transform_3, window_bounds = array<i64: 16, 768>}]} {
    %c0 = arith.constant 0 : index
    %c0_0 = arith.constant 0 : index
    %0 = vector.load %arg1[%c0, %c0_0] : memref<16x768xf32, #tpu.memory_space<vmem>>, vector<16x768xf32>
    %cst = arith.constant dense<0.000000e+00> : vector<16xf32>
    %1 = vector.multi_reduction <add>, %0, %cst [1] : vector<16x768xf32> to vector<16xf32>
    %2 = vector.shape_cast %1 : vector<16xf32> to vector<16x1xf32>
    %3 = arith.mulf %0, %0 : vector<16x768xf32>
    %cst_1 = arith.constant dense<0.000000e+00> : vector<16xf32>
    %4 = vector.multi_reduction <add>, %3, %cst_1 [1] : vector<16x768xf32> to vector<16xf32>
    %5 = vector.shape_cast %4 : vector<16xf32> to vector<16x1xf32>
    %cst_2 = arith.constant 0.00130208337 : f32
    %6 = vector.broadcast %cst_2 : f32 to vector<16x1xf32>
    %7 = arith.mulf %2, %6 : vector<16x1xf32>
    %cst_3 = arith.constant 0.00130208337 : f32
    %8 = vector.broadcast %cst_3 : f32 to vector<16x1xf32>
    %9 = arith.mulf %5, %8 : vector<16x1xf32>
    %10 = arith.mulf %7, %7 : vector<16x1xf32>
    %11 = arith.subf %9, %10 : vector<16x1xf32>
    %cst_4 = arith.constant 0.000000e+00 : f32
    %12 = vector.broadcast %cst_4 : f32 to vector<16x1xf32>
    %13 = arith.maximumf %11, %12 : vector<16x1xf32>
    %cst_5 = arith.constant 9.99999974E-6 : f32
    %14 = vector.broadcast %cst_5 : f32 to vector<16x1xf32>
    %15 = arith.addf %13, %14 : vector<16x1xf32>
    %16 = math.rsqrt %15 : vector<16x1xf32>
    %c0_6 = arith.constant 0 : index
    %c0_7 = arith.constant 0 : index
    %17 = vector.load %arg2[%c0_6, %c0_7] : memref<1x768xf32, #tpu.memory_space<vmem>>, vector<1x768xf32>
    %c0_8 = arith.constant 0 : index
    %c0_9 = arith.constant 0 : index
    %18 = vector.load %arg3[%c0_8, %c0_9] : memref<1x768xf32, #tpu.memory_space<vmem>>, vector<1x768xf32>
    %19 = vector.broadcast %7 : vector<16x1xf32> to vector<16x768xf32>
    %20 = arith.subf %0, %19 : vector<16x768xf32>
    %21 = vector.broadcast %16 : vector<16x1xf32> to vector<16x768xf32>
    %22 = arith.mulf %20, %21 : vector<16x768xf32>
    %23 = vector.broadcast %17 : vector<1x768xf32> to vector<16x768xf32>
    %24 = arith.mulf %22, %23 : vector<16x768xf32>
    %25 = vector.broadcast %18 : vector<1x768xf32> to vector<16x768xf32>
    %26 = arith.addf %24, %25 : vector<16x768xf32>
    %c0_10 = arith.constant 0 : index
    %c0_11 = arith.constant 0 : index
    %27 = vector.load %arg4[%c0_10, %c0_11] : memref<16x768xf32, #tpu.memory_space<vmem>>, vector<16x768xf32>
    tpu.vector_store %arg4[%c0_10, %c0_11], %26 {strides = array<i32>} : memref<16x768xf32, #tpu.memory_space<vmem>>, vector<16x768xf32>,
    return
  }
  func.func @transform_0(%arg0: i32) -> (i32, i32) {
    %c0_i32 = arith.constant 0 : i32
    %c0_i32_0 = arith.constant 0 : i32
    return %arg0, %c0_i32 : i32, i32
  }
  func.func @transform_1(%arg0: i32) -> (i32, i32) {
    %c0_i32 = arith.constant 0 : i32
    %c0_i32_0 = arith.constant 0 : i32
    %c0_i32_1 = arith.constant 0 : i32
    return %c0_i32, %c0_i32_0 : i32, i32
  }
  func.func @transform_2(%arg0: i32) -> (i32, i32) {
    %c0_i32 = arith.constant 0 : i32
    %c0_i32_0 = arith.constant 0 : i32
    %c0_i32_1 = arith.constant 0 : i32
    return %c0_i32, %c0_i32_0 : i32, i32
  }
  func.func @transform_3(%arg0: i32) -> (i32, i32) {
    %c0_i32 = arith.constant 0 : i32
    %c0_i32_0 = arith.constant 0 : i32
    return %arg0, %c0_i32 : i32, i32
  }
}

</mosaic_0001>

<bundles_post_ra>
// kernel: tpu_custom_call.1
= control target key start
LH: loop header
LB: loop body
LE: loop exit
PB: predicated region body
PF: predicated region fallthrough
CT: control target
= control target key end

     0   :  { %8 = vsyncpa [#allocation3], 0  ;;  %s482_s0 = inlined_call_operand.hbm [shape: f32[16,768], index: 0, kind: input, shape index: {}]   ;;  %s483_s1 = inlined_call_operand.hbm [shape: f32[1,768], index: 1, kind: input, shape index: {}]   ;;  %s484_s2 = inlined_call_operand.vmem [shape: f32[1,768], index: 2, kind: input, shape index: {}]   ;;  %s485_s3 = inlined_call_operand.hbm [shape: f32[16,768], index: 3, kind: output, shape index: {}]  }
   0x1   :  { %9 = vsyncpa [#allocation6], 0 }
   0x2   :  { %10 = vsyncpa [#allocation4], 0  ;;  %s330_s12 = smov [#allocation2]   ;;  %s258_s16 = scalar_lea.hbm %s482_s0, 1536 }
   0x3   :  { %s16_s13 = sshll.u32 %s330_s12, 4  ;;  %p259_p0 = scmp.ne.s32.totalorder %s482_s0, %s258_s16  ;;  %s17_s13 = int_to_ptr.vmem [resolvable:$true] %s16_s13 }
   0x4   :  { %p262_p1 = scmp.lt.u32.totalorder %s258_s16, %s482_s0 }
   0x6   :  { %p264_p2 = pnand %p262_p1, %p259_p0 }
   0x8   :  { %267 = shalt.err (!%p264_p2)
}
   0x9   :  { %s268_s21 = scalar_lea.vmem %s17_s13, 1536  ;;  %p273_p4 = scmp.lt.s32.totalorder %s17_s13, %s17_s13 }
   0xa   :  { %p269_p3 = scmp.ne.s32.totalorder %s17_s13, %s268_s21  ;;  %p274_p5 = scmp.lt.s32.totalorder %s268_s21, %s268_s21 }
   0xc   :  { %p275_p6 = por %p274_p5, %p273_p4 }
   0xe   :  { %p276_p7 = pnand %p275_p6, %p269_p3 }
  0x10   :  { %279 = shalt.err (!%p276_p7)
}
  0x11   :  { %s331_s22 = smov 768   ;;  %s332_s23 = smov 48  }
  0x12   :  { %22 = dma.hbm_to_vmem [thread:$0]  %s482_s0, 1536, %s17_s13, [#allocation3], %s331_s22, %s331_s22, %s332_s23  }
  0x13   :  { %s333_s26 = smov [#allocation5]   ;;  %s280_s30 = scalar_lea.hbm %s483_s1, 96 }
  0x14   :  { %s29_s27 = sshll.u32 %s333_s26, 4  ;;  %p281_p8 = scmp.ne.s32.totalorder %s483_s1, %s280_s30  ;;  %s30_s27 = int_to_ptr.vmem [resolvable:$true] %s29_s27 }
  0x15   :  { %p284_p9 = scmp.lt.u32.totalorder %s280_s30, %s483_s1 }
  0x17   :  { %p286_p10 = pnand %p284_p9, %p281_p8 }
  0x19   :  { %289 = shalt.err (!%p286_p10)
}
  0x1a   :  { %s290_s8 = scalar_lea.vmem %s30_s27, 96  ;;  %p295_p12 = scmp.lt.s32.totalorder %s30_s27, %s30_s27 }
  0x1b   :  { %p291_p11 = scmp.ne.s32.totalorder %s30_s27, %s290_s8  ;;  %p296_p13 = scmp.lt.s32.totalorder %s290_s8, %s290_s8 }
  0x1d   :  { %p297_p0 = por %p296_p13, %p295_p12 }
  0x1f   :  { %p298_p1 = pnand %p297_p0, %p291_p11 }
  0x21   :  { %301 = shalt.err (!%p298_p1)
}
  0x22   :  { %32 = dma.hbm_to_vmem [thread:$0]  %s483_s1, 96, %s30_s27, [#allocation6]  }
  0x23   :  { %324 = dma.done.wait [#allocation3], 1536  }
  0x24   :  { %325 = vsyncadd [#allocation3], 4294965760 }
  0x25   :  { %326 = dma.done.wait [#allocation6], 96  }
  0x26   :  { %327 = vsyncadd [#allocation6], 4294967200  ;;  %v382_v0 = vld [vmem:[#allocation2] sm:$0xff]  ;;  %v384_v1 = vld [vmem:[#allocation2 + $0x8] sm:$0xff]  ;;  %v134_v53 = vlaneseq }
  0x27   :  { %v386_v2 = vld [vmem:[#allocation2 + $0x10] sm:$0xff]  ;;  %v388_v3 = vld [vmem:[#allocation2 + $0x18] sm:$0xff]  ;;  %v390_v4 = vld [vmem:[#allocation2 + $0x20] sm:$0xff]  ;;  %v53_v5 = vadd.f32 %v384_v1, %v382_v0  ;;  %v67_v6 = vmul.f32 %v382_v0, %v382_v0  ;;  %v68_v7 = vmul.f32 %v384_v1, %v384_v1 }
  0x28   :  { %v69_v8 = vmul.f32 %v386_v2, %v386_v2  ;;  %v70_v9 = vmul.f32 %v388_v3, %v388_v3  ;;  %v402_v10 = vld [vmem:[#allocation2 + $0x30] sm:$0xff]  ;;  %v404_v11 = vld [vmem:[#allocation2 + $0x38] sm:$0xff]  ;;  %v406_v12 = vld [vmem:[#allocation2 + $0x40] sm:$0xff]  ;;  %v71_v22 = vmul.f32 %v390_v4, %v390_v4  ;;  %v135_v58 = vshrl.u32 %v134_v53, 7 }
  0x29   :  { %v54_v13 = vadd.f32 %v53_v5, %v386_v2  ;;  %v79_v14 = vadd.f32 %v68_v7, %v67_v6  ;;  %v409_v15 = vld [vmem:[#allocation2 + $0x48] sm:$0xff]  ;;  %v60_v16 = vadd.f32 %v404_v11, %v402_v10  ;;  %v73_v17 = vmul.f32 %v402_v10, %v402_v10  ;;  %v424_v24 = vld [vmem:[#allocation2 + $0x50] sm:$0xff]  ;;  %v432_v31 = vld [vmem:[#allocation2 + $0x58] sm:$0xff] }
  0x2a   :  { %v415_v18 = vld [vmem:[#allocation2 + $0x28] sm:$0xff]  ;;  %v74_v19 = vmul.f32 %v404_v11, %v404_v11  ;;  %v75_v20 = vmul.f32 %v406_v12, %v406_v12  ;;  %v76_v26 = vmul.f32 %v409_v15, %v409_v15  ;;  %v77_v33 = vmul.f32 %v424_v24, %v424_v24  ;;  %v107_v7 = vld [vmem:[#allocation5] sm:$0x3f] }
  0x2b   :  { %v55_v21 = vadd.f32 %v54_v13, %v388_v3  ;;  %v80_v23 = vadd.f32 %v79_v14, %v69_v8  ;;  %v61_v25 = vadd.f32 %v60_v16, %v406_v12  ;;  %v72_v29 = vmul.f32 %v415_v18, %v415_v18  ;;  %v108_v13 = vld [vmem:[%s484_s2] sm:$0x3f]  ;;  %s334_s2 = smov [#allocation7]  }
  0x2c   :  { %v86_v27 = vadd.f32 %v74_v19, %v73_v17  ;;  %v78_v38 = vmul.f32 %v432_v31, %v432_v31  ;;  %v136_v61 = vsub.s32 0, %v135_v58  ;;  %v140_v62 = vsub.s32 1, %v135_v58  ;;  %s236_s11 = sshll.u32 %s334_s2, 4  ;;  %s237_s11 = int_to_ptr.vmem [resolvable:$true] %s236_s11 }
  0x2d   :  { %v56_v28 = vadd.f32 %v55_v21, %v390_v4  ;;  %v81_v30 = vadd.f32 %v80_v23, %v70_v9  ;;  %v62_v32 = vadd.f32 %v61_v25, %v409_v15  ;;  %v144_v63 = vsub.s32 2, %v135_v58  ;;  %s302_s12 = scalar_lea.vmem %s237_s11, 1536  ;;  %p307_p3 = scmp.lt.s32.totalorder %s237_s11, %s237_s11 }
  0x2e   :  { %v87_v34 = vadd.f32 %v86_v27, %v75_v20  ;;  %v148_v5 = vsub.s32 3, %v135_v58  ;;  %v152_v8 = vsub.s32 4, %v135_v58  ;;  %v156_v9 = vsub.s32 5, %v135_v58  ;;  %p303_p2 = scmp.ne.s32.totalorder %s237_s11, %s302_s12  ;;  %p308_p4 = scmp.lt.s32.totalorder %s302_s12, %s302_s12 }
  0x2f   :  { %v57_v35 = vadd.f32 %v56_v28, %v415_v18  ;;  %v82_v36 = vadd.f32 %v81_v30, %v71_v22  ;;  %v63_v37 = vadd.f32 %v62_v32, %v424_v24  ;;  %v137_v14 = vrot.slane %v107_v7, %v136_v61 }
  0x30   :  { %v88_v39 = vadd.f32 %v87_v34, %v76_v26  ;;  %v141_v16 = vrot.slane %v107_v7, %v140_v62  ;;  %v145_v17 = vrot.slane %v107_v7, %v144_v63  ;;  %v149_v19 = vrot.slane %v107_v7, %v148_v5  ;;  %p309_p5 = por %p308_p4, %p307_p3 }
  0x31   :  { %58 = vadd.xlane.f32.xlu0 %v57_v35  ;;  %v83_v40 = vadd.f32 %v82_v36, %v72_v29  ;;  %v64_v41 = vadd.f32 %v63_v37, %v432_v31  ;;  %v153_v20 = vrot.slane %v107_v7, %v152_v8  ;;  %v157_v21 = vrot.slane %v107_v7, %v156_v9 }
  0x32   :  { %v89_v42 = vadd.f32 %v88_v39, %v77_v33  ;;  %v180_v22 = vrot.slane %v108_v13, %v136_v61  ;;  %v184_v23 = vrot.slane %v108_v13, %v140_v62  ;;  %v188_v25 = vrot.slane %v108_v13, %v144_v63  ;;  %p310_p6 = pnand %p309_p5, %p303_p2 }
  0x33   :  { %84 = vadd.xlane.f32.xlu1 %v83_v40  ;;  %v192_v26 = vrot.slane %v108_v13, %v148_v5  ;;  %v196_v27 = vrot.slane %v108_v13, %v152_v8  ;;  %v200_v28 = vrot.slane %v108_v13, %v156_v9 }
  0x34   :  { %v90_v43 = vadd.f32 %v89_v42, %v78_v38 }
  0x35   :  { %65 = vadd.xlane.f32.xlu0 %v64_v41 }
  0x37   :  { %91 = vadd.xlane.f32.xlu1 %v90_v43 }
  0xbe   :  { %v59_v44 = vpop.xlane.xlu0 %58 }
  0xbf   :  { %v93_v45 = vmul.f32 0.0013020834, %v59_v44 }
  0xc0   :  { %v85_v46 = vpop.xlane.xlu1 %84 }
  0xc1   :  { %v95_v47 = vmul.f32 0.0013020834, %v85_v46  ;;  %v97_v48 = vmul.f32 %v93_v45, %v93_v45  ;;  %v109_v29 = vsub.f32 %v382_v0, %v93_v45  ;;  %v110_v30 = vsub.f32 %v384_v1, %v93_v45 }
  0xc2   :  { %v66_v49 = vpop.xlane.xlu0 %65  ;;  %v111_v32 = vsub.f32 %v386_v2, %v93_v45  ;;  %v112_v33 = vsub.f32 %v388_v3, %v93_v45  ;;  %v113_v35 = vsub.f32 %v390_v4, %v93_v45  ;;  %v114_v36 = vsub.f32 %v415_v18, %v93_v45 }
  0xc3   :  { %v442_v50 = vmul.f32 0.0013020834, %v66_v49  ;;  %v99_v51 = vsub.f32 %v95_v47, %v97_v48 }
  0xc4   :  { %v92_v52 = vpop.xlane.xlu1 %91 }
  0xc5   :  { %v101_v54 = vmax.f32 %v99_v51, 0.0  ;;  %v96_v55 = vmul.f32 0.0013020834, %v92_v52  ;;  %v98_v56 = vmul.f32 %v442_v50, %v442_v50  ;;  %v115_v37 = vsub.f32 %v402_v10, %v442_v50 }
  0xc6   :  { %v116_v38 = vsub.f32 %v404_v11, %v442_v50  ;;  %v117_v1 = vsub.f32 %v406_v12, %v442_v50  ;;  %v118_v2 = vsub.f32 %v409_v15, %v442_v50  ;;  %v119_v10 = vsub.f32 %v424_v24, %v442_v50 }
  0xc7   :  { %v103_v57 = vadd.f32 1e-05, %v101_v54  ;;  %v100_v59 = vsub.f32 %v96_v55, %v98_v56  ;;  %v120_v11 = vsub.f32 %v432_v31, %v442_v50 }
  0xc9   :  { %254 = vrsqrt.f32 %v103_v57  ;;  %v102_v60 = vmax.f32 %v100_v59, 0.0 }
  0xcb   :  { %v104_v6 = vadd.f32 1e-05, %v102_v60 }
  0xcd   :  { %256 = vrsqrt.f32 %v104_v6 }
  0xd3   :  { %v255_v34 = vpop.eup %254 }
  0xd4   :  { %v121_v39 = vmul.f32 %v255_v34, %v109_v29  ;;  %v122_v40 = vmul.f32 %v255_v34, %v110_v30  ;;  %v123_v0 = vmul.f32 %v255_v34, %v111_v32  ;;  %v124_v41 = vmul.f32 %v255_v34, %v112_v33 }
  0xd5   :  { %v125_v3 = vmul.f32 %v255_v34, %v113_v35  ;;  %v126_v4 = vmul.f32 %v255_v34, %v114_v36 }
  0xd6   :  { %v164_v42 = vmul.f32 %v137_v14, %v121_v39  ;;  %v165_v18 = vmul.f32 %v141_v16, %v122_v40  ;;  %v166_v43 = vmul.f32 %v145_v17, %v123_v0  ;;  %v167_v44 = vmul.f32 %v149_v19, %v124_v41 }
  0xd7   :  { %v168_v45 = vmul.f32 %v153_v20, %v125_v3  ;;  %v169_v46 = vmul.f32 %v157_v21, %v126_v4  ;;  %v257_v47 = vpop.eup %256 }
  0xd8   :  { %v207_v48 = vadd.f32 %v180_v22, %v164_v42  ;;  %v208_v12 = vadd.f32 %v184_v23, %v165_v18  ;;  %v209_v49 = vadd.f32 %v188_v25, %v166_v43  ;;  %v210_v51 = vadd.f32 %v192_v26, %v167_v44 }
  0xd9   :  { %v127_v15 = vmul.f32 %v257_v47, %v115_v37  ;;  %v128_v52 = vmul.f32 %v257_v47, %v116_v38  ;;  %v129_v53 = vmul.f32 %v257_v47, %v117_v1  ;;  %v130_v54 = vmul.f32 %v257_v47, %v118_v2 }
  0xda   :  { %v131_v55 = vmul.f32 %v257_v47, %v119_v10  ;;  %v132_v56 = vmul.f32 %v257_v47, %v120_v11  ;;  %v211_v57 = vadd.f32 %v196_v27, %v168_v45  ;;  %v212_v58 = vadd.f32 %v200_v28, %v169_v46  ;;  %219 = vst [vmem:[#allocation7] sm:$0xff] %v207_v48 }
  0xdb   :  { %220 = vst [vmem:[#allocation7 + $0x8] sm:$0xff] %v208_v12  ;;  %221 = vst [vmem:[#allocation7 + $0x10] sm:$0xff] %v209_v49  ;;  %v170_v24 = vmul.f32 %v137_v14, %v127_v15  ;;  %v171_v31 = vmul.f32 %v141_v16, %v128_v52  ;;  %v172_v50 = vmul.f32 %v145_v17, %v129_v53 }
  0xdc   :  { %222 = vst [vmem:[#allocation7 + $0x18] sm:$0xff] %v210_v51  ;;  %v173_v59 = vmul.f32 %v149_v19, %v130_v54  ;;  %v174_v60 = vmul.f32 %v153_v20, %v131_v55  ;;  %v175_v61 = vmul.f32 %v157_v21, %v132_v56  ;;  %223 = vst [vmem:[#allocation7 + $0x20] sm:$0xff] %v211_v57 }
  0xdd   :  { %224 = vst [vmem:[#allocation7 + $0x28] sm:$0xff] %v212_v58  ;;  %v213_v62 = vadd.f32 %v180_v22, %v170_v24  ;;  %v214_v63 = vadd.f32 %v184_v23, %v171_v31  ;;  %v215_v5 = vadd.f32 %v188_v25, %v172_v50 }
  0xde   :  { %v216_v6 = vadd.f32 %v192_v26, %v173_v59  ;;  %v217_v7 = vadd.f32 %v196_v27, %v174_v60  ;;  %v218_v8 = vadd.f32 %v200_v28, %v175_v61 }
  0xdf   :  { %225 = vst [vmem:[#allocation7 + $0x30] sm:$0xff] %v213_v62  ;;  %226 = vst [vmem:[#allocation7 + $0x38] sm:$0xff] %v214_v63 }
  0xe0   :  { %227 = vst [vmem:[#allocation7 + $0x40] sm:$0xff] %v215_v5  ;;  %228 = vst [vmem:[#allocation7 + $0x48] sm:$0xff] %v216_v6 }
  0xe1   :  { %229 = vst [vmem:[#allocation7 + $0x50] sm:$0xff] %v217_v7  ;;  %230 = vst [vmem:[#allocation7 + $0x58] sm:$0xff] %v218_v8 }
  0xe2   :  { %313 = shalt.err (!%p310_p6)
}
  0xe3   :  { %s314_s15 = scalar_lea.hbm %s485_s3, 1536 }
  0xe4   :  { %p315_p7 = scmp.ne.s32.totalorder %s485_s3, %s314_s15  ;;  %p318_p8 = scmp.lt.u32.totalorder %s314_s15, %s485_s3 }
  0xe6   :  { %p320_p9 = pnand %p318_p8, %p315_p7 }
  0xe8   :  { %323 = shalt.err (!%p320_p9)
}
  0xe9   :  { %242 = dma.vmem_to_hbm [thread:$0]  %s237_s11, 1536, %s485_s3, [#allocation4], %s331_s22, %s331_s22, %s332_s23  }
  0xea   :  { %328 = dma.done.wait [#allocation4], 1536  }
  0xeb   :  { %329 = vsyncadd [#allocation4], 4294965760 }
  0xec   :  { %246 = vsyncpa [#allocation3], 1 }
  0xed   :  { %247 = vsyncpa [#allocation6], 1 }
  0xee   :  { %248 = vsyncpa [#allocation4], 1 }

</bundles_post_ra>
